<compile_context>
chip_gen: v5e
topology: v5e:2x2
jax: 0.10.0
libtpu: 0.0.40
codegen_flags: <defaults>
</compile_context>

<pallas_src>
import functools

import jax
import jax.numpy as jnp
from jax.experimental import pallas as pl
from jax.experimental.pallas import tpu as pltpu

IN_FEATURES = 3 * 32 * 32  # 3072
NUM_CLASSES = 10
C_PAD = 128                # lane-dense class dimension
MAX_TILE_B = 1024          # double-buffered x tile = 24 MiB -> fits v5e/v6e/v7x


def _round_up(x, m):
    return ((x + m - 1) // m) * m


def _logreg_kernel(x_ref, w_ref, b_ref, o_ref):
    # x_ref: [TILE_B, D] f32 (streamed per grid step),
    # w_ref: [D, C_PAD] f32 (VMEM-resident), b_ref: [1, C_PAD] f32 (resident),
    # o_ref: [TILE_B, C_PAD] f32.
    o_ref[...] = (
        jnp.dot(x_ref[...], w_ref[...], preferred_element_type=jnp.float32)
        + b_ref[...]
    )


def prepare_params(weight, bias):
    """One-time parameter prep (hoisted out of the forward pass).

    weight: [C, 3072] (torch nn.Linear layout), bias: [C].
    Returns (w_t_pad [3072, C_PAD], b_pad [1, C_PAD]) zero-padded on lanes.
    """
    c = weight.shape[0]
    w_t = jnp.transpose(weight).astype(jnp.float32)                      # [D, C]
    w_t_pad = jnp.zeros((IN_FEATURES, C_PAD), jnp.float32).at[:, :c].set(w_t)
    b_pad = jnp.zeros((1, C_PAD), jnp.float32).at[0, :c].set(
        bias.astype(jnp.float32))
    return w_t_pad, b_pad


@functools.partial(jax.jit, static_argnames=("num_classes",))
def logistic_regression_forward(x_nchw, w_t_pad, b_pad, num_classes=NUM_CLASSES):
    """x_nchw: [B, 3, 32, 32]; w_t_pad: [3072, 128]; b_pad: [1, 128]."""
    B = x_nchw.shape[0]
    # Flatten exactly like torch.flatten(x, 1) (row-major, free reshape).
    x2d = x_nchw.reshape(B, -1).astype(jnp.float32)                      # [B, 3072]

    # Batch tile: multiple of 8 (sublane), capped at 1024 for VMEM, and at
    # ~B/2 so the batch grid has >= 2 steps -> both v7x TensorCores stream
    # half the batch concurrently for mid-size batches.
    tile_b = min(MAX_TILE_B, max(8, _round_up(-(-B // 2), 8)))
    grid = (pl.cdiv(B, tile_b),)

    # Honest (pad-free) traffic estimate for XLA's scheduler.
    flops = 2 * B * IN_FEATURES * C_PAD
    bytes_accessed = 4 * (
        B * IN_FEATURES          # x streamed once
        + IN_FEATURES * C_PAD    # W fetched once (resident)
        + C_PAD                  # bias
        + B * C_PAD              # output
    )

    out = pl.pallas_call(
        _logreg_kernel,
        out_shape=jax.ShapeDtypeStruct((B, C_PAD), jnp.float32),
        grid=grid,
        in_specs=[
            pl.BlockSpec((tile_b, IN_FEATURES), lambda i: (i, 0)),   # streamed
            pl.BlockSpec((IN_FEATURES, C_PAD), lambda i: (0, 0)),    # resident
            pl.BlockSpec((1, C_PAD), lambda i: (0, 0)),              # resident
        ],
        out_specs=pl.BlockSpec((tile_b, C_PAD), lambda i: (i, 0)),
        compiler_params=pltpu.CompilerParams(
            dimension_semantics=("parallel",),
            vmem_limit_bytes=48 * 1024 * 1024,
        ),
        cost_estimate=pl.CostEstimate(
            flops=flops, transcendentals=0, bytes_accessed=bytes_accessed
        ),
    )(x2d, w_t_pad, b_pad)

    # Ragged tail rows (if any) were never written / are dropped by the
    # (B, C_PAD) out_shape; just strip the lane padding.
    return out[:, :num_classes]


def init_params(key, num_classes=NUM_CLASSES):
    # Deterministic init mirroring nn.Linear default: U(-k, k), k = 1/sqrt(fan_in)
    kw, kb = jax.random.split(key)
    bound = 1.0 / jnp.sqrt(jnp.float32(IN_FEATURES))
    weight = jax.random.uniform(
        kw, (num_classes, IN_FEATURES), jnp.float32, -bound, bound
    )
    bias = jax.random.uniform(kb, (num_classes,), jnp.float32, -bound, bound)
    return weight, bias


if __name__ == "__main__":
    key = jax.random.PRNGKey(0)
    kx, kp = jax.random.split(key)

    weight, bias = init_params(kp, NUM_CLASSES)
    # One-time parameter prep (transpose + lane padding), hoisted out of forward.
    w_t_pad, b_padded = prepare_params(weight, bias)

    # batch=2: smaller than one tile; batch=18: exercises the ragged
    # (masked) last block with no out-of-kernel padding.
    for batch in (2, 18):
        x = jax.random.normal(
            jax.random.fold_in(kx, batch), (batch, 3, 32, 32), jnp.float32
        )
        y = logistic_regression_forward(x, w_t_pad, b_padded, NUM_CLASSES)
        y = jax.block_until_ready(y)

        # Reference check against plain JAX (same math as PyTorch's Linear).
        y_ref = x.reshape(batch, -1) @ weight.T + bias
        assert y.shape == (batch, NUM_CLASSES)
        assert jnp.allclose(y, y_ref, atol=1e-4, rtol=1e-4)

    print("KERNEL_OK")
</pallas_src>

<mosaic_0001>
module attributes {stable_mosaic.version = 11 : i64} {
  func.func @_logreg_kernel(%arg0: i32, %arg1: memref<8x3072xf32, #tpu.memory_space<vmem>>, %arg2: memref<3072x128xf32, #tpu.memory_space<vmem>>, %arg3: memref<1x128xf32, #tpu.memory_space<vmem>>, %arg4: memref<8x128xf32, #tpu.memory_space<vmem>>) attributes {dimension_semantics = [#tpu.dimension_semantics<parallel>], iteration_bounds = array<i64: 1>, scalar_prefetch = 0 : i64, scratch_operands = 0 : i64, tpu.core_type = #tpu.core_type<tc>, window_params = [{transform_indices = @transform_0, window_bounds = array<i64: 8, 3072>}, {pipeline_mode = #tpu.pipeline_mode<synchronous>, transform_indices = @transform_1, window_bounds = array<i64: 3072, 128>}, {pipeline_mode = #tpu.pipeline_mode<synchronous>, transform_indices = @transform_2, window_bounds = array<i64: 1, 128>}, {transform_indices = @transform_3, window_bounds = array<i64: 8, 128>}]} {
    %c0 = arith.constant 0 : index
    %c0_0 = arith.constant 0 : index
    %0 = vector.load %arg1[%c0, %c0_0] : memref<8x3072xf32, #tpu.memory_space<vmem>>, vector<8x3072xf32>
    %c0_1 = arith.constant 0 : index
    %c0_2 = arith.constant 0 : index
    %1 = vector.load %arg2[%c0_1, %c0_2] : memref<3072x128xf32, #tpu.memory_space<vmem>>, vector<3072x128xf32>
    %cst = arith.constant dense<0.000000e+00> : vector<8x128xf32>
    %2 = tpu.matmul %0, %1, %cst {dimension_numbers = #tpu.dot_dimension_numbers<[1], [0], [0], [1], [0, 0, 1, 1], [], []>} : vector<8x3072xf32>, vector<3072x128xf32>, vector<8x128xf32> -> vector<8x128xf32>
    %c0_3 = arith.constant 0 : index
    %c0_4 = arith.constant 0 : index
    %3 = vector.load %arg3[%c0_3, %c0_4] : memref<1x128xf32, #tpu.memory_space<vmem>>, vector<1x128xf32>
    %4 = vector.broadcast %3 : vector<1x128xf32> to vector<8x128xf32>
    %5 = arith.addf %2, %4 : vector<8x128xf32>
    %c0_5 = arith.constant 0 : index
    %c0_6 = arith.constant 0 : index
    %6 = vector.load %arg4[%c0_5, %c0_6] : memref<8x128xf32, #tpu.memory_space<vmem>>, vector<8x128xf32>
    tpu.vector_store %arg4[%c0_5, %c0_6], %5 {strides = array<i32>} : memref<8x128xf32, #tpu.memory_space<vmem>>, vector<8x128xf32>,
    return
  }
  func.func @transform_0(%arg0: i32) -> (i32, i32) {
    %c0_i32 = arith.constant 0 : i32
    %c0_i32_0 = arith.constant 0 : i32
    return %arg0, %c0_i32 : i32, i32
  }
  func.func @transform_1(%arg0: i32) -> (i32, i32) {
    %c0_i32 = arith.constant 0 : i32
    %c0_i32_0 = arith.constant 0 : i32
    %c0_i32_1 = arith.constant 0 : i32
    return %c0_i32, %c0_i32_0 : i32, i32
  }
  func.func @transform_2(%arg0: i32) -> (i32, i32) {
    %c0_i32 = arith.constant 0 : i32
    %c0_i32_0 = arith.constant 0 : i32
    %c0_i32_1 = arith.constant 0 : i32
    return %c0_i32, %c0_i32_0 : i32, i32
  }
  func.func @transform_3(%arg0: i32) -> (i32, i32) {
    %c0_i32 = arith.constant 0 : i32
    %c0_i32_0 = arith.constant 0 : i32
    return %arg0, %c0_i32 : i32, i32
  }
}

</mosaic_0001>

<bundles_post_ra>
// kernel: logistic_regression_forward.1
= control target key start
LH: loop header
LB: loop body
LE: loop exit
PB: predicated region body
PF: predicated region fallthrough
CT: control target
= control target key end

     0   :  { %8 = vsyncpa [#allocation3], 0  ;;  %s1255_s0 = inlined_call_operand.vmem [shape: f32[2,3072], index: 0, kind: input, shape index: {}]   ;;  %s1256_s1 = inlined_call_operand.hbm [shape: f32[3072,128], index: 1, kind: input, shape index: {}]   ;;  %s1257_s2 = inlined_call_operand.hbm [shape: f32[1,128], index: 2, kind: input, shape index: {}]   ;;  %s1258_s3 = inlined_call_operand.hbm [shape: f32[2,128], index: 3, kind: output, shape index: {}]  }
   0x1   :  { %9 = vsyncpa [#allocation6], 0 }
   0x2   :  { %10 = vsyncpa [#allocation4], 0  ;;  %s17_s14 = sshll.u32 %s1256_s1, 4  ;;  %s1147_s15 = smov [#allocation2]   ;;  %s18_s14 = int_to_ptr.hbm [resolvable:$true] %s17_s14 }
   0x3   :  { %s19_s16 = sshll.u32 %s1147_s15, 4  ;;  %s31_s19 = sshll.u32 %s1257_s2, 4  ;;  %s20_s16 = int_to_ptr.vmem [resolvable:$true] %s19_s16  ;;  %s32_s19 = int_to_ptr.hbm [resolvable:$true] %s31_s19 }
   0x4   :  { %s1148_s20 = smov 128   ;;  %s1149_s21 = smov 8  }
   0x5   :  { %25 = dma.hbm_to_vmem [thread:$0]  %s18_s14, 49152, %s20_s16, [#allocation3], %s1148_s20, %s1148_s20, %s1149_s21  }
   0x6   :  { %s1150_s22 = smov [#allocation5]  }
   0x7   :  { %s33_s23 = sshll.u32 %s1150_s22, 4  ;;  %s34_s23 = int_to_ptr.vmem [resolvable:$true] %s33_s23 }
   0x8   :  { %36 = dma.hbm_to_vmem [thread:$0]  %s32_s19, 16, %s34_s23, [#allocation6]  }
   0x9   :  { %1141 = dma.done.wait [#allocation3], 49152  }
   0xa   :  { %1142 = vsyncadd [#allocation3], 4294918144 }
   0xb   :  { %1143 = dma.done.wait [#allocation6], 16  }
   0xc   :  { %1144 = vsyncadd [#allocation6], 4294967280  ;;  %v84_v0 = vld [vmem:[#allocation2 + $0x78] sm:$0xff]  ;;  %v83_v2 = vld [vmem:[#allocation2 + $0x70] sm:$0xff] }
   0xd   :  { %v116_v1 = vld [vmem:[#allocation2 + $0x178] sm:$0xff]  ;;  %560 = vmatpush.msra.mxu0 %v84_v0  ;;  %v115_v4 = vld [vmem:[#allocation2 + $0x170] sm:$0xff]  ;;  %v82_v6 = vld [vmem:[#allocation2 + $0x68] sm:$0xff] }
   0xe   :  { %600 = vmatpush.msra.mxu2 %v116_v1  ;;  %v100_v3 = vld [vmem:[#allocation2 + $0xf8] sm:$0xff]  ;;  %v99_v7 = vld [vmem:[#allocation2 + $0xf0] sm:$0xff]  ;;  %v114_v8 = vld [vmem:[#allocation2 + $0x168] sm:$0xff] }
   0xf   :  { %v132_v5 = vld [vmem:[#allocation2 + $0x1f8] sm:$0xff]  ;;  %580 = vmatpush.msra.mxu1 %v100_v3  ;;  %561 = vmatpush.msra.mxu0 %v83_v2  ;;  %v131_v9 = vld [vmem:[#allocation2 + $0x1f0] sm:$0xff]  ;;  %v98_v10 = vld [vmem:[#allocation2 + $0xe8] sm:$0xff] }
  0x10   :  { %620 = vmatpush.msra.mxu3 %v132_v5  ;;  %601 = vmatpush.msra.mxu2 %v115_v4  ;;  %v81_v11 = vld [vmem:[#allocation2 + $0x60] sm:$0xff]  ;;  %v130_v13 = vld [vmem:[#allocation2 + $0x1e8] sm:$0xff]  ;;  %v80_v16 = vld [vmem:[#allocation2 + $0x58] sm:$0xff] }
  0x11   :  { %581 = vmatpush.msra.mxu1 %v99_v7  ;;  %v113_v12 = vld [vmem:[#allocation2 + $0x160] sm:$0xff]  ;;  %562 = vmatpush.msra.mxu0 %v82_v6  ;;  %v112_v17 = vld [vmem:[#allocation2 + $0x158] sm:$0xff]  ;;  %v79_v20 = vld [vmem:[#allocation2 + $0x50] sm:$0xff] }
  0x12   :  { %621 = vmatpush.msra.mxu3 %v131_v9  ;;  %602 = vmatpush.msra.mxu2 %v114_v8  ;;  %v97_v14 = vld [vmem:[#allocation2 + $0xe0] sm:$0xff]  ;;  %v96_v18 = vld [vmem:[#allocation2 + $0xd8] sm:$0xff]  ;;  %v111_v21 = vld [vmem:[#allocation2 + $0x150] sm:$0xff] }
  0x13   :  { %v129_v15 = vld [vmem:[#allocation2 + $0x1e0] sm:$0xff]  ;;  %582 = vmatpush.msra.mxu1 %v98_v10  ;;  %563 = vmatpush.msra.mxu0 %v81_v11  ;;  %v128_v19 = vld [vmem:[#allocation2 + $0x1d8] sm:$0xff]  ;;  %v95_v22 = vld [vmem:[#allocation2 + $0xd0] sm:$0xff] }
  0x14   :  { %622 = vmatpush.msra.mxu3 %v130_v13  ;;  %603 = vmatpush.msra.mxu2 %v113_v12  ;;  %v127_v23 = vld [vmem:[#allocation2 + $0x1d0] sm:$0xff]  ;;  %v78_v24 = vld [vmem:[#allocation2 + $0x48] sm:$0xff]  ;;  %v77_v28 = vld [vmem:[#allocation2 + $0x40] sm:$0xff] }
  0x15   :  { %583 = vmatpush.msra.mxu1 %v97_v14  ;;  %564 = vmatpush.msra.mxu0 %v80_v16  ;;  %v110_v25 = vld [vmem:[#allocation2 + $0x148] sm:$0xff]  ;;  %v109_v29 = vld [vmem:[#allocation2 + $0x140] sm:$0xff]  ;;  %v76_v32 = vld [vmem:[#allocation2 + $0x38] sm:$0xff] }
  0x16   :  { %623 = vmatpush.msra.mxu3 %v129_v15  ;;  %604 = vmatpush.msra.mxu2 %v112_v17  ;;  %v94_v26 = vld [vmem:[#allocation2 + $0xc8] sm:$0xff]  ;;  %v93_v30 = vld [vmem:[#allocation2 + $0xc0] sm:$0xff]  ;;  %v108_v33 = vld [vmem:[#allocation2 + $0x138] sm:$0xff] }
  0x17   :  { %584 = vmatpush.msra.mxu1 %v96_v18  ;;  %565 = vmatpush.msra.mxu0 %v79_v20  ;;  %v126_v27 = vld [vmem:[#allocation2 + $0x1c8] sm:$0xff]  ;;  %v125_v31 = vld [vmem:[#allocation2 + $0x1c0] sm:$0xff]  ;;  %v92_v34 = vld [vmem:[#allocation2 + $0xb8] sm:$0xff] }
  0x18   :  { %624 = vmatpush.msra.mxu3 %v128_v19  ;;  %605 = vmatpush.msra.mxu2 %v111_v21  ;;  %v124_v35 = vld [vmem:[#allocation2 + $0x1b8] sm:$0xff]  ;;  %v75_v36 = vld [vmem:[#allocation2 + $0x30] sm:$0xff]  ;;  %v74_v40 = vld [vmem:[#allocation2 + $0x28] sm:$0xff] }
  0x19   :  { %585 = vmatpush.msra.mxu1 %v95_v22  ;;  %566 = vmatpush.msra.mxu0 %v78_v24  ;;  %v107_v37 = vld [vmem:[#allocation2 + $0x130] sm:$0xff]  ;;  %v106_v41 = vld [vmem:[#allocation2 + $0x128] sm:$0xff]  ;;  %v73_v44 = vld [vmem:[#allocation2 + $0x20] sm:$0xff] }
  0x1a   :  { %625 = vmatpush.msra.mxu3 %v127_v23  ;;  %606 = vmatpush.msra.mxu2 %v110_v25  ;;  %v91_v38 = vld [vmem:[#allocation2 + $0xb0] sm:$0xff]  ;;  %v90_v42 = vld [vmem:[#allocation2 + $0xa8] sm:$0xff]  ;;  %v105_v45 = vld [vmem:[#allocation2 + $0x120] sm:$0xff] }
  0x1b   :  { %586 = vmatpush.msra.mxu1 %v94_v26  ;;  %567 = vmatpush.msra.mxu0 %v77_v28  ;;  %v123_v39 = vld [vmem:[#allocation2 + $0x1b0] sm:$0xff]  ;;  %v122_v43 = vld [vmem:[#allocation2 + $0x1a8] sm:$0xff]  ;;  %v89_v46 = vld [vmem:[#allocation2 + $0xa0] sm:$0xff] }
  0x1c   :  { %626 = vmatpush.msra.mxu3 %v126_v27  ;;  %607 = vmatpush.msra.mxu2 %v109_v29  ;;  %v121_v47 = vld [vmem:[#allocation2 + $0x1a0] sm:$0xff]  ;;  %v72_v48 = vld [vmem:[#allocation2 + $0x18] sm:$0xff]  ;;  %v71_v52 = vld [vmem:[#allocation2 + $0x10] sm:$0xff] }
  0x1d   :  { %587 = vmatpush.msra.mxu1 %v93_v30  ;;  %568 = vmatpush.msra.mxu0 %v76_v32  ;;  %v104_v49 = vld [vmem:[#allocation2 + $0x118] sm:$0xff]  ;;  %v103_v53 = vld [vmem:[#allocation2 + $0x110] sm:$0xff]  ;;  %v70_v56 = vld [vmem:[#allocation2 + $0x8] sm:$0xff] }
  0x1e   :  { %627 = vmatpush.msra.mxu3 %v125_v31  ;;  %608 = vmatpush.msra.mxu2 %v108_v33  ;;  %v88_v50 = vld [vmem:[#allocation2 + $0x98] sm:$0xff]  ;;  %v87_v54 = vld [vmem:[#allocation2 + $0x90] sm:$0xff]  ;;  %v102_v57 = vld [vmem:[#allocation2 + $0x108] sm:$0xff] }
  0x1f   :  { %588 = vmatpush.msra.mxu1 %v92_v34  ;;  %569 = vmatpush.msra.mxu0 %v75_v36  ;;  %v120_v51 = vld [vmem:[#allocation2 + $0x198] sm:$0xff]  ;;  %v119_v55 = vld [vmem:[#allocation2 + $0x190] sm:$0xff]  ;;  %v86_v58 = vld [vmem:[#allocation2 + $0x88] sm:$0xff] }
  0x20   :  { %628 = vmatpush.msra.mxu3 %v124_v35  ;;  %609 = vmatpush.msra.mxu2 %v107_v37  ;;  %v118_v59 = vld [vmem:[#allocation2 + $0x188] sm:$0xff]  ;;  %v69_v60 = vld [vmem:[#allocation2] sm:$0xff]  ;;  %v148_v62 = vld [vmem:[#allocation2 + $0x278] sm:$0xff] }
  0x21   :  { %589 = vmatpush.msra.mxu1 %v91_v38  ;;  %570 = vmatpush.msra.mxu0 %v74_v40  ;;  %v101_v61 = vld [vmem:[#allocation2 + $0x100] sm:$0xff]  ;;  %v180_v63 = vld [vmem:[#allocation2 + $0x378] sm:$0xff]  ;;  %v147_v2 = vld [vmem:[#allocation2 + $0x270] sm:$0xff] }
  0x22   :  { %629 = vmatpush.msra.mxu3 %v123_v39  ;;  %610 = vmatpush.msra.mxu2 %v106_v41  ;;  %v85_v0 = vld [vmem:[#allocation2 + $0x80] sm:$0xff]  ;;  %v164_v3 = vld [vmem:[#allocation2 + $0x2f8] sm:$0xff]  ;;  %v179_v4 = vld [vmem:[#allocation2 + $0x370] sm:$0xff] }
  0x23   :  { %590 = vmatpush.msra.mxu1 %v90_v42  ;;  %571 = vmatpush.msra.mxu0 %v73_v44  ;;  %v117_v1 = vld [vmem:[#allocation2 + $0x180] sm:$0xff]  ;;  %v196_v5 = vld [vmem:[#allocation2 + $0x3f8] sm:$0xff]  ;;  %v146_v6 = vld [vmem:[#allocation2 + $0x268] sm:$0xff] }
  0x24   :  { %630 = vmatpush.msra.mxu3 %v122_v43  ;;  %611 = vmatpush.msra.mxu2 %v105_v45  ;;  %v163_v7 = vld [vmem:[#allocation2 + $0x2f0] sm:$0xff]  ;;  %v178_v8 = vld [vmem:[#allocation2 + $0x368] sm:$0xff]  ;;  %v145_v10 = vld [vmem:[#allocation2 + $0x260] sm:$0xff] }
  0x25   :  { %591 = vmatpush.msra.mxu1 %v89_v46  ;;  %572 = vmatpush.msra.mxu0 %v72_v48  ;;  %v195_v9 = vld [vmem:[#allocation2 + $0x3f0] sm:$0xff]  ;;  %v162_v11 = vld [vmem:[#allocation2 + $0x2e8] sm:$0xff]  ;;  %v177_v12 = vld [vmem:[#allocation2 + $0x360] sm:$0xff] }
  0x26   :  { %631 = vmatpush.msra.mxu3 %v121_v47  ;;  %612 = vmatpush.msra.mxu2 %v104_v49  ;;  %v194_v13 = vld [vmem:[#allocation2 + $0x3e8] sm:$0xff]  ;;  %v144_v14 = vld [vmem:[#allocation2 + $0x258] sm:$0xff]  ;;  %v161_v15 = vld [vmem:[#allocation2 + $0x2e0] sm:$0xff] }
  0x27   :  { %592 = vmatpush.msra.mxu1 %v88_v50  ;;  %573 = vmatpush.msra.mxu0 %v71_v52  ;;  %v176_v16 = vld [vmem:[#allocation2 + $0x358] sm:$0xff]  ;;  %v193_v17 = vld [vmem:[#allocation2 + $0x3e0] sm:$0xff]  ;;  %v143_v18 = vld [vmem:[#allocation2 + $0x250] sm:$0xff] }
  0x28   :  { %632 = vmatpush.msra.mxu3 %v120_v51  ;;  %613 = vmatpush.msra.mxu2 %v103_v53  ;;  %v160_v19 = vld [vmem:[#allocation2 + $0x2d8] sm:$0xff]  ;;  %v175_v20 = vld [vmem:[#allocation2 + $0x350] sm:$0xff]  ;;  %v142_v22 = vld [vmem:[#allocation2 + $0x248] sm:$0xff] }
  0x29   :  { %593 = vmatpush.msra.mxu1 %v87_v54  ;;  %574 = vmatpush.msra.mxu0 %v70_v56  ;;  %v192_v21 = vld [vmem:[#allocation2 + $0x3d8] sm:$0xff]  ;;  %v159_v23 = vld [vmem:[#allocation2 + $0x2d0] sm:$0xff]  ;;  %v174_v24 = vld [vmem:[#allocation2 + $0x348] sm:$0xff] }
  0x2a   :  { %633 = vmatpush.msra.mxu3 %v119_v55  ;;  %614 = vmatpush.msra.mxu2 %v102_v57  ;;  %v191_v25 = vld [vmem:[#allocation2 + $0x3d0] sm:$0xff]  ;;  %v45_v26 = vld [vmem:[%s1255_s0] sm:$0xff]  ;;  %v51_v27 = vld [vmem:[%s1255_s0 + $0x30] sm:$0xff] }
  0x2b   :  { %594 = vmatpush.msra.mxu1 %v86_v58  ;;  %575 = vmatpush.msra.mxu0 %v69_v60  ;;  %v57_v28 = vld [vmem:[%s1255_s0 + $0x60] sm:$0xff]  ;;  %v141_v29 = vld [vmem:[#allocation2 + $0x240] sm:$0xff]  ;;  %v158_v30 = vld [vmem:[#allocation2 + $0x2c8] sm:$0xff]  ;;  %481 = vst [vmem:[#allocation1] ss:$4 sm:$0xff] %v45_v26 }
  0x2c   :  { %634 = vmatpush.msra.mxu3 %v118_v59  ;;  %615 = vmatpush.msra.mxu2 %v101_v61  ;;  %v63_v31 = vld [vmem:[%s1255_s0 + $0x90] sm:$0xff]  ;;  %v173_v32 = vld [vmem:[#allocation2 + $0x340] sm:$0xff]  ;;  %483 = vst [vmem:[#allocation1 + $0x1] ss:$4 sm:$0xff] %v51_v27  ;;  %v140_v34 = vld [vmem:[#allocation2 + $0x238] sm:$0xff] }
  0x2d   :  { %640 = vmatpush.msrb.mxu0 %v148_v62  ;;  %595 = vmatpush.msra.mxu1 %v85_v0  ;;  %v190_v33 = vld [vmem:[#allocation2 + $0x3c8] sm:$0xff]  ;;  %v157_v35 = vld [vmem:[#allocation2 + $0x2c0] sm:$0xff]  ;;  %485 = vst [vmem:[#allocation1 + $0x2] ss:$4 sm:$0xff] %v57_v28  ;;  %v172_v36 = vld [vmem:[#allocation2 + $0x338] sm:$0xff] }
  0x2e   :  { %680 = vmatpush.msrb.mxu2 %v180_v63  ;;  %635 = vmatpush.msra.mxu3 %v117_v1  ;;  %v189_v37 = vld [vmem:[#allocation2 + $0x3c0] sm:$0xff]  ;;  %v139_v38 = vld [vmem:[#allocation2 + $0x230] sm:$0xff]  ;;  %487 = vst [vmem:[#allocation1 + $0x3] ss:$4 sm:$0xff] %v63_v31  ;;  %v156_v39 = vld [vmem:[#allocation2 + $0x2b8] sm:$0xff] }
  0x2f   :  { %641 = vmatpush.msrb.mxu0 %v147_v2  ;;  %660 = vmatpush.msrb.mxu1 %v164_v3  ;;  %v171_v40 = vld [vmem:[#allocation2 + $0x330] sm:$0xff]  ;;  %v188_v41 = vld [vmem:[#allocation2 + $0x3b8] sm:$0xff]  ;;  %v138_v42 = vld [vmem:[#allocation2 + $0x228] sm:$0xff] }
  0x30   :  { %681 = vmatpush.msrb.mxu2 %v179_v4  ;;  %700 = vmatpush.msrb.mxu3 %v196_v5  ;;  %v155_v43 = vld [vmem:[#allocation2 + $0x2b0] sm:$0xff]  ;;  %v46_v44 = vld [vmem:[%s1255_s0 + $0x8] sm:$0xff]  ;;  %v170_v48 = vld [vmem:[#allocation2 + $0x328] sm:$0xff] }
  0x31   :  { %642 = vmatpush.msrb.mxu0 %v146_v6  ;;  %661 = vmatpush.msrb.mxu1 %v163_v7  ;;  %v52_v45 = vld [vmem:[%s1255_s0 + $0x38] sm:$0xff]  ;;  %v58_v46 = vld [vmem:[%s1255_s0 + $0x68] sm:$0xff]  ;;  %489 = vst [vmem:[#allocation1 + $0x20] ss:$4 sm:$0xff] %v46_v44  ;;  %v154_v51 = vld [vmem:[#allocation2 + $0x2a8] sm:$0xff] }
  0x32   :  { %682 = vmatpush.msrb.mxu2 %v178_v8  ;;  %701 = vmatpush.msrb.mxu3 %v195_v9  ;;  %v64_v47 = vld [vmem:[%s1255_s0 + $0x98] sm:$0xff]  ;;  %491 = vst [vmem:[#allocation1 + $0x21] ss:$4 sm:$0xff] %v52_v45  ;;  %v137_v50 = vld [vmem:[#allocation2 + $0x220] sm:$0xff]  ;;  %v186_v53 = vld [vmem:[#allocation2 + $0x3a8] sm:$0xff] }
  0x33   :  { %643 = vmatpush.msrb.mxu0 %v145_v10  ;;  %662 = vmatpush.msrb.mxu1 %v162_v11  ;;  %v187_v49 = vld [vmem:[#allocation2 + $0x3b0] sm:$0xff]  ;;  %493 = vst [vmem:[#allocation1 + $0x22] ss:$4 sm:$0xff] %v58_v46  ;;  %v169_v52 = vld [vmem:[#allocation2 + $0x320] sm:$0xff]  ;;  %v136_v54 = vld [vmem:[#allocation2 + $0x218] sm:$0xff] }
  0x34   :  { %683 = vmatpush.msrb.mxu2 %v177_v12  ;;  %702 = vmatpush.msrb.mxu3 %v194_v13  ;;  %495 = vst [vmem:[#allocation1 + $0x23] ss:$4 sm:$0xff] %v64_v47  ;;  %v153_v55 = vld [vmem:[#allocation2 + $0x2a0] sm:$0xff]  ;;  %v168_v56 = vld [vmem:[#allocation2 + $0x318] sm:$0xff]  ;;  %v135_v58 = vld [vmem:[#allocation2 + $0x210] sm:$0xff] }
  0x35   :  { %644 = vmatpush.msrb.mxu0 %v144_v14  ;;  %663 = vmatpush.msrb.mxu1 %v161_v15  ;;  %v185_v57 = vld [vmem:[#allocation2 + $0x3a0] sm:$0xff]  ;;  %v152_v59 = vld [vmem:[#allocation2 + $0x298] sm:$0xff]  ;;  %v167_v60 = vld [vmem:[#allocation2 + $0x310] sm:$0xff] }
  0x36   :  { %684 = vmatpush.msrb.mxu2 %v176_v16  ;;  %703 = vmatpush.msrb.mxu3 %v193_v17  ;;  %v184_v61 = vld [vmem:[#allocation2 + $0x398] sm:$0xff]  ;;  %v134_v62 = vld [vmem:[#allocation2 + $0x208] sm:$0xff]  ;;  %v151_v63 = vld [vmem:[#allocation2 + $0x290] sm:$0xff] }
  0x37   :  { %645 = vmatpush.msrb.mxu0 %v143_v18  ;;  %664 = vmatpush.msrb.mxu1 %v160_v19  ;;  %v166_v0 = vld [vmem:[#allocation2 + $0x308] sm:$0xff]  ;;  %v183_v1 = vld [vmem:[#allocation2 + $0x390] sm:$0xff]  ;;  %v133_v2 = vld [vmem:[#allocation2 + $0x200] sm:$0xff] }
  0x38   :  { %685 = vmatpush.msrb.mxu2 %v175_v20  ;;  %704 = vmatpush.msrb.mxu3 %v192_v21  ;;  %v150_v3 = vld [vmem:[#allocation2 + $0x288] sm:$0xff]  ;;  %v165_v4 = vld [vmem:[#allocation2 + $0x300] sm:$0xff]  ;;  %v496_v6 = vld.sshfl [vmem:[#allocation1] sm:$0xff pattern:$0x73625140] }
  0x39   :  { %646 = vmatpush.msrb.mxu0 %v142_v22  ;;  %665 = vmatpush.msrb.mxu1 %v159_v23  ;;  %v182_v5 = vld [vmem:[#allocation2 + $0x388] sm:$0xff]  ;;  %v212_v8 = vld [vmem:[#allocation2 + $0x478] sm:$0xff]  ;;  %v149_v10 = vld [vmem:[#allocation2 + $0x280] sm:$0xff] }
  0x3a   :  { %686 = vmatpush.msrb.mxu2 %v174_v24  ;;  %705 = vmatpush.msrb.mxu3 %v191_v25  ;;  %v498_v7 = vld.sshfl [vmem:[#allocation1 + $0x10] sm:$0xff pattern:$0x73625140]  ;;  %v244_v9 = vld [vmem:[#allocation2 + $0x578] sm:$0xff]  ;;  %v181_v11 = vld [vmem:[#allocation2 + $0x380] sm:$0xff] }
  0x3b   :  { %647 = vmatpush.msrb.mxu0 %v141_v29  ;;  %666 = vmatpush.msrb.mxu1 %v158_v30  ;;  %v497_v12 = vld.sshfl [vmem:[#allocation1 + $0x8] sm:$0xff pattern:$0x73625140]  ;;  %v499_v13 = vld.sshfl [vmem:[#allocation1 + $0x18] sm:$0xff pattern:$0x73625140] }
  0x3c   :  { %687 = vmatpush.msrb.mxu2 %v173_v32  ;;  %706 = vmatpush.msrb.mxu3 %v190_v33  ;;  %v211_v14 = vld [vmem:[#allocation2 + $0x470] sm:$0xff]  ;;  %v228_v15 = vld [vmem:[#allocation2 + $0x4f8] sm:$0xff]  ;;  %v210_v18 = vld [vmem:[#allocation2 + $0x468] sm:$0xff] }
  0x3d   :  { %648 = vmatpush.msrb.mxu0 %v140_v34  ;;  %667 = vmatpush.msrb.mxu1 %v157_v35  ;;  %v243_v16 = vld [vmem:[#allocation2 + $0x570] sm:$0xff]  ;;  %v260_v17 = vld [vmem:[#allocation2 + $0x5f8] sm:$0xff]  ;;  %v242_v20 = vld [vmem:[#allocation2 + $0x568] sm:$0xff] }
  0x3e   :  { %688 = vmatpush.msrb.mxu2 %v172_v36  ;;  %707 = vmatpush.msrb.mxu3 %v189_v37  ;;  %v227_v19 = vld [vmem:[#allocation2 + $0x4f0] sm:$0xff]  ;;  %v209_v22 = vld [vmem:[#allocation2 + $0x460] sm:$0xff]  ;;  %v226_v23 = vld [vmem:[#allocation2 + $0x4e8] sm:$0xff] }
  0x3f   :  { %649 = vmatpush.msrb.mxu0 %v139_v38  ;;  %668 = vmatpush.msrb.mxu1 %v156_v39  ;;  %v259_v21 = vld [vmem:[#allocation2 + $0x5f0] sm:$0xff]  ;;  %v241_v24 = vld [vmem:[#allocation2 + $0x560] sm:$0xff]  ;;  %v258_v25 = vld [vmem:[#allocation2 + $0x5e8] sm:$0xff] }
  0x40   :  { %689 = vmatpush.msrb.mxu2 %v171_v40  ;;  %708 = vmatpush.msrb.mxu3 %v188_v41  ;;  %v208_v26 = vld [vmem:[#allocation2 + $0x458] sm:$0xff]  ;;  %v47_v27 = vld [vmem:[%s1255_s0 + $0x10] sm:$0xff]  ;;  %v225_v32 = vld [vmem:[#allocation2 + $0x4e0] sm:$0xff] }
  0x41   :  { %650 = vmatpush.msrb.mxu0 %v138_v42  ;;  %669 = vmatpush.msrb.mxu1 %v155_v43  ;;  %v53_v28 = vld [vmem:[%s1255_s0 + $0x40] sm:$0xff]  ;;  %v59_v29 = vld [vmem:[%s1255_s0 + $0x70] sm:$0xff]  ;;  %504 = vst [vmem:[#allocation1] ss:$4 sm:$0xff] %v47_v27  ;;  %v257_v34 = vld [vmem:[#allocation2 + $0x5e0] sm:$0xff] }
  0x42   :  { %690 = vmatpush.msrb.mxu2 %v170_v48  ;;  %709 = vmatpush.msrb.mxu3 %v187_v49  ;;  %v502_v30 = vld.sshfl [vmem:[#allocation1 + $0x30] sm:$0xff pattern:$0x73625140]  ;;  %v65_v31 = vld [vmem:[%s1255_s0 + $0xa0] sm:$0xff]  ;;  %505 = vst [vmem:[#allocation1 + $0x1] ss:$4 sm:$0xff] %v53_v28 }
  0x43   :  { %651 = vmatpush.msrb.mxu0 %v137_v50  ;;  %670 = vmatpush.msrb.mxu1 %v154_v51  ;;  %v240_v33 = vld [vmem:[#allocation2 + $0x558] sm:$0xff]  ;;  %506 = vst [vmem:[#allocation1 + $0x2] ss:$4 sm:$0xff] %v59_v29  ;;  %v503_v36 = vld.sshfl [vmem:[#allocation1 + $0x38] sm:$0xff pattern:$0x73625140] }
  0x44   :  { %691 = vmatpush.msrb.mxu2 %v169_v52  ;;  %710 = vmatpush.msrb.mxu3 %v186_v53  ;;  %v500_v35 = vld.sshfl [vmem:[#allocation1 + $0x20] sm:$0xff pattern:$0x73625140]  ;;  %v207_v37 = vld [vmem:[#allocation2 + $0x450] sm:$0xff]  ;;  %507 = vst [vmem:[#allocation1 + $0x3] ss:$4 sm:$0xff] %v65_v31 }
  0x45   :  { %652 = vmatpush.msrb.mxu0 %v136_v54  ;;  %671 = vmatpush.msrb.mxu1 %v153_v55  ;;  %v224_v38 = vld [vmem:[#allocation2 + $0x4d8] sm:$0xff]  ;;  %v239_v39 = vld [vmem:[#allocation2 + $0x550] sm:$0xff]  ;;  %v501_v41 = vld.sshfl [vmem:[#allocation1 + $0x28] sm:$0xff pattern:$0x73625140] }
  0x46   :  { %692 = vmatpush.msrb.mxu2 %v168_v56  ;;  %711 = vmatpush.msrb.mxu3 %v185_v57  ;;  %v256_v40 = vld [vmem:[#allocation2 + $0x5d8] sm:$0xff]  ;;  %v206_v42 = vld [vmem:[#allocation2 + $0x448] sm:$0xff]  ;;  %v223_v43 = vld [vmem:[#allocation2 + $0x4d0] sm:$0xff] }
  0x47   :  { %653 = vmatpush.msrb.mxu0 %v135_v58  ;;  %672 = vmatpush.msrb.mxu1 %v152_v59  ;;  %v238_v44 = vld [vmem:[#allocation2 + $0x548] sm:$0xff]  ;;  %v255_v45 = vld [vmem:[#allocation2 + $0x5d0] sm:$0xff]  ;;  %v205_v46 = vld [vmem:[#allocation2 + $0x440] sm:$0xff] }
  0x48   :  { %693 = vmatpush.msrb.mxu2 %v167_v60  ;;  %712 = vmatpush.msrb.mxu3 %v184_v61  ;;  %v222_v47 = vld [vmem:[#allocation2 + $0x4c8] sm:$0xff]  ;;  %v237_v48 = vld [vmem:[#allocation2 + $0x540] sm:$0xff]  ;;  %v204_v50 = vld [vmem:[#allocation2 + $0x438] sm:$0xff] }
  0x49   :  { %654 = vmatpush.msrb.mxu0 %v134_v62  ;;  %673 = vmatpush.msrb.mxu1 %v151_v63  ;;  %v254_v49 = vld [vmem:[#allocation2 + $0x5c8] sm:$0xff]  ;;  %v221_v51 = vld [vmem:[#allocation2 + $0x4c0] sm:$0xff]  ;;  %v236_v52 = vld [vmem:[#allocation2 + $0x538] sm:$0xff] }
  0x4a   :  { %694 = vmatpush.msrb.mxu2 %v166_v0  ;;  %713 = vmatpush.msrb.mxu3 %v183_v1  ;;  %v253_v53 = vld [vmem:[#allocation2 + $0x5c0] sm:$0xff]  ;;  %v203_v54 = vld [vmem:[#allocation2 + $0x430] sm:$0xff]  ;;  %v220_v55 = vld [vmem:[#allocation2 + $0x4b8] sm:$0xff] }
  0x4b   :  { %655 = vmatpush.msrb.mxu0 %v133_v2  ;;  %674 = vmatpush.msrb.mxu1 %v150_v3  ;;  %v235_v56 = vld [vmem:[#allocation2 + $0x530] sm:$0xff]  ;;  %v252_v57 = vld [vmem:[#allocation2 + $0x5b8] sm:$0xff]  ;;  %v202_v58 = vld [vmem:[#allocation2 + $0x428] sm:$0xff] }
  0x4c   :  { %695 = vmatpush.msrb.mxu2 %v165_v4  ;;  %714 = vmatpush.msrb.mxu3 %v182_v5  ;;  %v219_v59 = vld [vmem:[#allocation2 + $0x4b0] sm:$0xff]  ;;  %v234_v60 = vld [vmem:[#allocation2 + $0x528] sm:$0xff]  ;;  %v201_v62 = vld [vmem:[#allocation2 + $0x420] sm:$0xff] }
  0x4d   :  { %576 = vmatmul.f32.vlgmr.msra.gmra.mxu0 %v496_v6  ;;  %616 = vmatmul.f32.vlgmr.msra.gmra.mxu2 %v498_v7  ;;  %v251_v61 = vld [vmem:[#allocation2 + $0x5b0] sm:$0xff]  ;;  %v218_v63 = vld [vmem:[#allocation2 + $0x4a8] sm:$0xff]  ;;  %v233_v0 = vld [vmem:[#allocation2 + $0x520] sm:$0xff] }
  0x4e   :  { %720 = vmatpush.msra.mxu0 %v212_v8  ;;  %760 = vmatpush.msra.mxu2 %v244_v9  ;;  %v250_v1 = vld [vmem:[#allocation2 + $0x5a8] sm:$0xff]  ;;  %v200_v2 = vld [vmem:[#allocation2 + $0x418] sm:$0xff]  ;;  %v217_v3 = vld [vmem:[#allocation2 + $0x4a0] sm:$0xff] }
  0x4f   :  { %675 = vmatpush.msrb.mxu1 %v149_v10  ;;  %715 = vmatpush.msrb.mxu3 %v181_v11  ;;  %v232_v4 = vld [vmem:[#allocation2 + $0x518] sm:$0xff]  ;;  %v249_v5 = vld [vmem:[#allocation2 + $0x5a0] sm:$0xff]  ;;  %v199_v6 = vld [vmem:[#allocation2 + $0x410] sm:$0xff] }
  0x50   :  { %596 = vmatmul.f32.vlgmr.msra.gmra.mxu1 %v497_v12  ;;  %636 = vmatmul.f32.vlgmr.msra.gmra.mxu3 %v499_v13  ;;  %v216_v7 = vld [vmem:[#allocation2 + $0x498] sm:$0xff]  ;;  %v231_v8 = vld [vmem:[#allocation2 + $0x510] sm:$0xff]  ;;  %v198_v10 = vld [vmem:[#allocation2 + $0x408] sm:$0xff] }
  0x51   :  { %721 = vmatpush.msra.mxu0 %v211_v14  ;;  %740 = vmatpush.msra.mxu1 %v228_v15  ;;  %v248_v9 = vld [vmem:[#allocation2 + $0x598] sm:$0xff]  ;;  %v215_v11 = vld [vmem:[#allocation2 + $0x490] sm:$0xff]  ;;  %v230_v12 = vld [vmem:[#allocation2 + $0x508] sm:$0xff] }
  0x52   :  { %761 = vmatpush.msra.mxu2 %v243_v16  ;;  %780 = vmatpush.msra.mxu3 %v260_v17  ;;  %v48_v13 = vld [vmem:[%s1255_s0 + $0x18] sm:$0xff]  ;;  %v54_v14 = vld [vmem:[%s1255_s0 + $0x48] sm:$0xff]  ;;  %v214_v17 = vld [vmem:[#allocation2 + $0x488] sm:$0xff] }
  0x53   :  { %722 = vmatpush.msra.mxu0 %v210_v18  ;;  %741 = vmatpush.msra.mxu1 %v227_v19  ;;  %v247_v15 = vld [vmem:[#allocation2 + $0x590] sm:$0xff]  ;;  %v197_v16 = vld [vmem:[#allocation2 + $0x400] sm:$0xff]  ;;  %508 = vst [vmem:[#allocation1 + $0x20] ss:$4 sm:$0xff] %v48_v13  ;;  %v292_v31 = vld [vmem:[#allocation2 + $0x6f8] sm:$0xff] }
  0x54   :  { %762 = vmatpush.msra.mxu2 %v242_v20  ;;  %781 = vmatpush.msra.mxu3 %v259_v21  ;;  %v229_v18 = vld [vmem:[#allocation2 + $0x500] sm:$0xff]  ;;  %v60_v19 = vld [vmem:[%s1255_s0 + $0x78] sm:$0xff]  ;;  %509 = vst [vmem:[#allocation1 + $0x21] ss:$4 sm:$0xff] %v54_v14  ;;  %v246_v21 = vld [vmem:[#allocation2 + $0x588] sm:$0xff] }
  0x55   :  { %723 = vmatpush.msra.mxu0 %v209_v22  ;;  %742 = vmatpush.msra.mxu1 %v226_v23  ;;  %v66_v20 = vld [vmem:[%s1255_s0 + $0xa8] sm:$0xff]  ;;  %v512_v22 = vld.sshfl [vmem:[#allocation1] sm:$0xff pattern:$0x73625140]  ;;  %510 = vst [vmem:[#allocation1 + $0x22] ss:$4 sm:$0xff] %v60_v19 }
  0x56   :  { %763 = vmatpush.msra.mxu2 %v241_v24  ;;  %782 = vmatpush.msra.mxu3 %v258_v25  ;;  %v514_v23 = vld.sshfl [vmem:[#allocation1 + $0x10] sm:$0xff pattern:$0x73625140]  ;;  %511 = vst [vmem:[#allocation1 + $0x23] ss:$4 sm:$0xff] %v66_v20  ;;  %v276_v24 = vld [vmem:[#allocation2 + $0x678] sm:$0xff] }
  0x57   :  { %696 = vmatmul.f32.vlgmr.msrb.gmra.mxu2 %v502_v30  ;;  %724 = vmatpush.msra.mxu0 %v208_v26  ;;  %v308_v25 = vld [vmem:[#allocation2 + $0x778] sm:$0xff]  ;;  %v213_v26 = vld [vmem:[#allocation2 + $0x480] sm:$0xff]  ;;  %v515_v29 = vld.sshfl [vmem:[#allocation1 + $0x18] sm:$0xff pattern:$0x73625140] }
  0x58   :  { %743 = vmatpush.msra.mxu1 %v225_v32  ;;  %764 = vmatpush.msra.mxu2 %v240_v33  ;;  %v245_v27 = vld [vmem:[#allocation2 + $0x580] sm:$0xff]  ;;  %v275_v30 = vld [vmem:[#allocation2 + $0x670] sm:$0xff]  ;;  %v324_v33 = vld [vmem:[#allocation2 + $0x7f8] sm:$0xff] }
  0x59   :  { %783 = vmatpush.msra.mxu3 %v257_v34  ;;  %656 = vmatmul.f32.vlgmr.msrb.gmra.mxu0 %v500_v35  ;;  %v513_v28 = vld.sshfl [vmem:[#allocation1 + $0x8] sm:$0xff pattern:$0x73625140]  ;;  %v307_v32 = vld [vmem:[#allocation2 + $0x770] sm:$0xff]  ;;  %v274_v34 = vld [vmem:[#allocation2 + $0x668] sm:$0xff] }
  0x5a   :  { %716 = vmatmul.f32.vlgmr.msrb.gmra.mxu3 %v503_v36  ;;  %725 = vmatpush.msra.mxu0 %v207_v37  ;;  %v291_v35 = vld [vmem:[#allocation2 + $0x6f0] sm:$0xff]  ;;  %v306_v36 = vld [vmem:[#allocation2 + $0x768] sm:$0xff]  ;;  %v313_v13 = vld [vmem:[#allocation2 + $0x7a0] sm:$0xff] }
  0x5b   :  { %744 = vmatpush.msra.mxu1 %v224_v38  ;;  %765 = vmatpush.msra.mxu2 %v239_v39  ;;  %v323_v37 = vld [vmem:[#allocation2 + $0x7f0] sm:$0xff]  ;;  %v273_v38 = vld [vmem:[#allocation2 + $0x660] sm:$0xff]  ;;  %v290_v39 = vld [vmem:[#allocation2 + $0x6e8] sm:$0xff] }
  0x5c   :  { %784 = vmatpush.msra.mxu3 %v256_v40  ;;  %676 = vmatmul.f32.vlgmr.msrb.gmra.mxu1 %v501_v41  ;;  %v305_v40 = vld [vmem:[#allocation2 + $0x760] sm:$0xff]  ;;  %v322_v41 = vld [vmem:[#allocation2 + $0x7e8] sm:$0xff]  ;;  %v263_v14 = vld [vmem:[#allocation2 + $0x610] sm:$0xff] }
  0x5d   :  { %726 = vmatpush.msra.mxu0 %v206_v42  ;;  %745 = vmatpush.msra.mxu1 %v223_v43  ;;  %v272_v42 = vld [vmem:[#allocation2 + $0x658] sm:$0xff]  ;;  %v289_v43 = vld [vmem:[#allocation2 + $0x6e0] sm:$0xff]  ;;  %v279_v19 = vld [vmem:[#allocation2 + $0x690] sm:$0xff] }
  0x5e   :  { %766 = vmatpush.msra.mxu2 %v238_v44  ;;  %785 = vmatpush.msra.mxu3 %v255_v45  ;;  %v304_v44 = vld [vmem:[#allocation2 + $0x758] sm:$0xff]  ;;  %v321_v45 = vld [vmem:[#allocation2 + $0x7e0] sm:$0xff]  ;;  %v294_v20 = vld [vmem:[#allocation2 + $0x708] sm:$0xff] }
  0x5f   :  { %727 = vmatpush.msra.mxu0 %v205_v46  ;;  %746 = vmatpush.msra.mxu1 %v222_v47  ;;  %v271_v46 = vld [vmem:[#allocation2 + $0x650] sm:$0xff]  ;;  %v288_v47 = vld [vmem:[#allocation2 + $0x6d8] sm:$0xff] }
  0x60   :  { %767 = vmatpush.msra.mxu2 %v237_v48  ;;  %786 = vmatpush.msra.mxu3 %v254_v49  ;;  %v303_v48 = vld [vmem:[#allocation2 + $0x750] sm:$0xff]  ;;  %v320_v49 = vld [vmem:[#allocation2 + $0x7d8] sm:$0xff] }
  0x61   :  { %728 = vmatpush.msra.mxu0 %v204_v50  ;;  %747 = vmatpush.msra.mxu1 %v221_v51  ;;  %v270_v50 = vld [vmem:[#allocation2 + $0x648] sm:$0xff]  ;;  %v287_v51 = vld [vmem:[#allocation2 + $0x6d0] sm:$0xff] }
  0x62   :  { %768 = vmatpush.msra.mxu2 %v236_v52  ;;  %787 = vmatpush.msra.mxu3 %v253_v53  ;;  %v302_v52 = vld [vmem:[#allocation2 + $0x748] sm:$0xff]  ;;  %v319_v53 = vld [vmem:[#allocation2 + $0x7d0] sm:$0xff] }
  0x63   :  { %729 = vmatpush.msra.mxu0 %v203_v54  ;;  %748 = vmatpush.msra.mxu1 %v220_v55  ;;  %v269_v54 = vld [vmem:[#allocation2 + $0x640] sm:$0xff]  ;;  %v286_v55 = vld [vmem:[#allocation2 + $0x6c8] sm:$0xff] }
  0x64   :  { %769 = vmatpush.msra.mxu2 %v235_v56  ;;  %788 = vmatpush.msra.mxu3 %v252_v57  ;;  %v301_v56 = vld [vmem:[#allocation2 + $0x740] sm:$0xff]  ;;  %v318_v57 = vld [vmem:[#allocation2 + $0x7c8] sm:$0xff] }
  0x65   :  { %730 = vmatpush.msra.mxu0 %v202_v58  ;;  %749 = vmatpush.msra.mxu1 %v219_v59  ;;  %v268_v58 = vld [vmem:[#allocation2 + $0x638] sm:$0xff]  ;;  %v285_v59 = vld [vmem:[#allocation2 + $0x6c0] sm:$0xff] }
  0x66   :  { %770 = vmatpush.msra.mxu2 %v234_v60  ;;  %789 = vmatpush.msra.mxu3 %v251_v61  ;;  %v300_v60 = vld [vmem:[#allocation2 + $0x738] sm:$0xff]  ;;  %v317_v61 = vld [vmem:[#allocation2 + $0x7c0] sm:$0xff] }
  0x67   :  { %731 = vmatpush.msra.mxu0 %v201_v62  ;;  %750 = vmatpush.msra.mxu1 %v218_v63  ;;  %v267_v62 = vld [vmem:[#allocation2 + $0x630] sm:$0xff]  ;;  %v284_v63 = vld [vmem:[#allocation2 + $0x6b8] sm:$0xff] }
  0x68   :  { %771 = vmatpush.msra.mxu2 %v233_v0  ;;  %790 = vmatpush.msra.mxu3 %v250_v1  ;;  %v299_v0 = vld [vmem:[#allocation2 + $0x730] sm:$0xff]  ;;  %v316_v1 = vld [vmem:[#allocation2 + $0x7b8] sm:$0xff] }
  0x69   :  { %732 = vmatpush.msra.mxu0 %v200_v2  ;;  %751 = vmatpush.msra.mxu1 %v217_v3  ;;  %v266_v2 = vld [vmem:[#allocation2 + $0x628] sm:$0xff]  ;;  %v283_v3 = vld [vmem:[#allocation2 + $0x6b0] sm:$0xff] }
  0x6a   :  { %772 = vmatpush.msra.mxu2 %v232_v4  ;;  %791 = vmatpush.msra.mxu3 %v249_v5  ;;  %v298_v4 = vld [vmem:[#allocation2 + $0x728] sm:$0xff]  ;;  %v315_v5 = vld [vmem:[#allocation2 + $0x7b0] sm:$0xff] }
  0x6b   :  { %733 = vmatpush.msra.mxu0 %v199_v6  ;;  %752 = vmatpush.msra.mxu1 %v216_v7  ;;  %v265_v6 = vld [vmem:[#allocation2 + $0x620] sm:$0xff]  ;;  %v282_v7 = vld [vmem:[#allocation2 + $0x6a8] sm:$0xff] }
  0x6c   :  { %773 = vmatpush.msra.mxu2 %v231_v8  ;;  %792 = vmatpush.msra.mxu3 %v248_v9  ;;  %v297_v8 = vld [vmem:[#allocation2 + $0x720] sm:$0xff]  ;;  %v314_v9 = vld [vmem:[#allocation2 + $0x7a8] sm:$0xff] }
  0x6d   :  { %734 = vmatpush.msra.mxu0 %v198_v10  ;;  %753 = vmatpush.msra.mxu1 %v215_v11  ;;  %v264_v10 = vld [vmem:[#allocation2 + $0x618] sm:$0xff]  ;;  %v281_v11 = vld [vmem:[#allocation2 + $0x6a0] sm:$0xff] }
  0x6e   :  { %774 = vmatpush.msra.mxu2 %v230_v12  ;;  %793 = vmatpush.msra.mxu3 %v247_v15  ;;  %v296_v12 = vld [vmem:[#allocation2 + $0x718] sm:$0xff] }
  0x6f   :  { %735 = vmatpush.msra.mxu0 %v197_v16  ;;  %754 = vmatpush.msra.mxu1 %v214_v17  ;;  %v280_v15 = vld [vmem:[#allocation2 + $0x698] sm:$0xff]  ;;  %v295_v16 = vld [vmem:[#allocation2 + $0x710] sm:$0xff] }
  0x70   :  { %775 = vmatpush.msra.mxu2 %v229_v18  ;;  %794 = vmatpush.msra.mxu3 %v246_v21  ;;  %v312_v17 = vld [vmem:[#allocation2 + $0x798] sm:$0xff]  ;;  %v262_v18 = vld [vmem:[#allocation2 + $0x608] sm:$0xff] }
  0x71   :  { %736 = vmatmul.f32.vlgmr.msra.gmra.mxu0 %v512_v22  ;;  %776 = vmatmul.f32.vlgmr.msra.gmra.mxu2 %v514_v23  ;;  %v49_v21 = vld [vmem:[%s1255_s0 + $0x20] sm:$0xff]  ;;  %v55_v22 = vld [vmem:[%s1255_s0 + $0x50] sm:$0xff]  ;;  %v311_v23 = vld [vmem:[#allocation2 + $0x790] sm:$0xff] }
  0x72   :  { %800 = vmatpush.msrb.mxu0 %v276_v24  ;;  %840 = vmatpush.msrb.mxu2 %v308_v25  ;;  %v261_v24 = vld [vmem:[#allocation2 + $0x600] sm:$0xff]  ;;  %v278_v25 = vld [vmem:[#allocation2 + $0x688] sm:$0xff]  ;;  %520 = vst [vmem:[#allocation1] ss:$4 sm:$0xff] %v49_v21 }
  0x73   :  { %755 = vmatpush.msra.mxu1 %v213_v26  ;;  %795 = vmatpush.msra.mxu3 %v245_v27  ;;  %v293_v26 = vld [vmem:[#allocation2 + $0x700] sm:$0xff]  ;;  %v61_v27 = vld [vmem:[%s1255_s0 + $0x80] sm:$0xff]  ;;  %521 = vst [vmem:[#allocation1 + $0x1] ss:$4 sm:$0xff] %v55_v22  ;;  %v327_v22 = vld [vmem:[#allocation2 + $0x810] sm:$0xff] }
  0x74   :  { %756 = vmatmul.f32.vlgmr.msra.gmra.mxu1 %v513_v28  ;;  %796 = vmatmul.f32.vlgmr.msra.gmra.mxu3 %v515_v29  ;;  %v67_v28 = vld [vmem:[%s1255_s0 + $0xb0] sm:$0xff]  ;;  %522 = vst [vmem:[#allocation1 + $0x2] ss:$4 sm:$0xff] %v61_v27  ;;  %v377_v21 = vld [vmem:[#allocation2 + $0x9a0] sm:$0xff]  ;;  %v343_v27 = vld [vmem:[#allocation2 + $0x890] sm:$0xff] }
  0x75   :  { %801 = vmatpush.msrb.mxu0 %v275_v30  ;;  %820 = vmatpush.msrb.mxu1 %v292_v31  ;;  %v310_v29 = vld [vmem:[#allocation2 + $0x788] sm:$0xff]  ;;  %v516_v30 = vld.sshfl [vmem:[#allocation1 + $0x20] sm:$0xff pattern:$0x73625140]  ;;  %523 = vst [vmem:[#allocation1 + $0x3] ss:$4 sm:$0xff] %v67_v28 }
  0x76   :  { %841 = vmatpush.msrb.mxu2 %v307_v32  ;;  %860 = vmatpush.msrb.mxu3 %v324_v33  ;;  %v518_v31 = vld.sshfl [vmem:[#allocation1 + $0x30] sm:$0xff pattern:$0x73625140]  ;;  %v340_v32 = vld [vmem:[#allocation2 + $0x878] sm:$0xff] }
  0x77   :  { %802 = vmatpush.msrb.mxu0 %v274_v34  ;;  %821 = vmatpush.msrb.mxu1 %v291_v35  ;;  %v372_v33 = vld [vmem:[#allocation2 + $0x978] sm:$0xff]  ;;  %v277_v34 = vld [vmem:[#allocation2 + $0x680] sm:$0xff]  ;;  %v358_v28 = vld [vmem:[#allocation2 + $0x908] sm:$0xff] }
  0x78   :  { %842 = vmatpush.msrb.mxu2 %v306_v36  ;;  %861 = vmatpush.msrb.mxu3 %v323_v37  ;;  %v309_v35 = vld [vmem:[#allocation2 + $0x780] sm:$0xff]  ;;  %v519_v37 = vld.sshfl [vmem:[#allocation1 + $0x38] sm:$0xff pattern:$0x73625140] }
  0x79   :  { %803 = vmatpush.msrb.mxu0 %v273_v38  ;;  %822 = vmatpush.msrb.mxu1 %v290_v39  ;;  %v517_v36 = vld.sshfl [vmem:[#allocation1 + $0x28] sm:$0xff pattern:$0x73625140]  ;;  %v339_v38 = vld [vmem:[#allocation2 + $0x870] sm:$0xff]  ;;  %v356_v39 = vld [vmem:[#allocation2 + $0x8f8] sm:$0xff] }
  0x7a   :  { %843 = vmatpush.msrb.mxu2 %v305_v40  ;;  %862 = vmatpush.msrb.mxu3 %v322_v41  ;;  %v371_v40 = vld [vmem:[#allocation2 + $0x970] sm:$0xff]  ;;  %v388_v41 = vld [vmem:[#allocation2 + $0x9f8] sm:$0xff] }
  0x7b   :  { %804 = vmatpush.msrb.mxu0 %v272_v42  ;;  %823 = vmatpush.msrb.mxu1 %v289_v43  ;;  %v338_v42 = vld [vmem:[#allocation2 + $0x868] sm:$0xff]  ;;  %v355_v43 = vld [vmem:[#allocation2 + $0x8f0] sm:$0xff] }
  0x7c   :  { %844 = vmatpush.msrb.mxu2 %v304_v44  ;;  %863 = vmatpush.msrb.mxu3 %v321_v45  ;;  %v370_v44 = vld [vmem:[#allocation2 + $0x968] sm:$0xff]  ;;  %v387_v45 = vld [vmem:[#allocation2 + $0x9f0] sm:$0xff] }
  0x7d   :  { %805 = vmatpush.msrb.mxu0 %v271_v46  ;;  %824 = vmatpush.msrb.mxu1 %v288_v47  ;;  %v337_v46 = vld [vmem:[#allocation2 + $0x860] sm:$0xff]  ;;  %v354_v47 = vld [vmem:[#allocation2 + $0x8e8] sm:$0xff] }
  0x7e   :  { %845 = vmatpush.msrb.mxu2 %v303_v48  ;;  %864 = vmatpush.msrb.mxu3 %v320_v49  ;;  %v369_v48 = vld [vmem:[#allocation2 + $0x960] sm:$0xff]  ;;  %v386_v49 = vld [vmem:[#allocation2 + $0x9e8] sm:$0xff] }
  0x7f   :  { %806 = vmatpush.msrb.mxu0 %v270_v50  ;;  %825 = vmatpush.msrb.mxu1 %v287_v51  ;;  %v336_v50 = vld [vmem:[#allocation2 + $0x858] sm:$0xff]  ;;  %v353_v51 = vld [vmem:[#allocation2 + $0x8e0] sm:$0xff] }
  0x80   :  { %846 = vmatpush.msrb.mxu2 %v302_v52  ;;  %865 = vmatpush.msrb.mxu3 %v319_v53  ;;  %v368_v52 = vld [vmem:[#allocation2 + $0x958] sm:$0xff]  ;;  %v385_v53 = vld [vmem:[#allocation2 + $0x9e0] sm:$0xff] }
  0x81   :  { %807 = vmatpush.msrb.mxu0 %v269_v54  ;;  %826 = vmatpush.msrb.mxu1 %v286_v55  ;;  %v335_v54 = vld [vmem:[#allocation2 + $0x850] sm:$0xff]  ;;  %v352_v55 = vld [vmem:[#allocation2 + $0x8d8] sm:$0xff] }
  0x82   :  { %847 = vmatpush.msrb.mxu2 %v301_v56  ;;  %866 = vmatpush.msrb.mxu3 %v318_v57  ;;  %v367_v56 = vld [vmem:[#allocation2 + $0x950] sm:$0xff]  ;;  %v384_v57 = vld [vmem:[#allocation2 + $0x9d8] sm:$0xff] }
  0x83   :  { %808 = vmatpush.msrb.mxu0 %v268_v58  ;;  %827 = vmatpush.msrb.mxu1 %v285_v59  ;;  %v334_v58 = vld [vmem:[#allocation2 + $0x848] sm:$0xff]  ;;  %v351_v59 = vld [vmem:[#allocation2 + $0x8d0] sm:$0xff] }
  0x84   :  { %848 = vmatpush.msrb.mxu2 %v300_v60  ;;  %867 = vmatpush.msrb.mxu3 %v317_v61  ;;  %v366_v60 = vld [vmem:[#allocation2 + $0x948] sm:$0xff]  ;;  %v383_v61 = vld [vmem:[#allocation2 + $0x9d0] sm:$0xff] }
  0x85   :  { %809 = vmatpush.msrb.mxu0 %v267_v62  ;;  %828 = vmatpush.msrb.mxu1 %v284_v63  ;;  %v333_v62 = vld [vmem:[#allocation2 + $0x840] sm:$0xff]  ;;  %v350_v63 = vld [vmem:[#allocation2 + $0x8c8] sm:$0xff] }
  0x86   :  { %849 = vmatpush.msrb.mxu2 %v299_v0  ;;  %868 = vmatpush.msrb.mxu3 %v316_v1  ;;  %v365_v0 = vld [vmem:[#allocation2 + $0x940] sm:$0xff]  ;;  %v382_v1 = vld [vmem:[#allocation2 + $0x9c8] sm:$0xff] }
  0x87   :  { %810 = vmatpush.msrb.mxu0 %v266_v2  ;;  %829 = vmatpush.msrb.mxu1 %v283_v3  ;;  %v332_v2 = vld [vmem:[#allocation2 + $0x838] sm:$0xff]  ;;  %v349_v3 = vld [vmem:[#allocation2 + $0x8c0] sm:$0xff] }
  0x88   :  { %850 = vmatpush.msrb.mxu2 %v298_v4  ;;  %869 = vmatpush.msrb.mxu3 %v315_v5  ;;  %v364_v4 = vld [vmem:[#allocation2 + $0x938] sm:$0xff]  ;;  %v381_v5 = vld [vmem:[#allocation2 + $0x9c0] sm:$0xff] }
  0x89   :  { %811 = vmatpush.msrb.mxu0 %v265_v6  ;;  %830 = vmatpush.msrb.mxu1 %v282_v7  ;;  %v331_v6 = vld [vmem:[#allocation2 + $0x830] sm:$0xff]  ;;  %v348_v7 = vld [vmem:[#allocation2 + $0x8b8] sm:$0xff] }
  0x8a   :  { %851 = vmatpush.msrb.mxu2 %v297_v8  ;;  %870 = vmatpush.msrb.mxu3 %v314_v9  ;;  %v363_v8 = vld [vmem:[#allocation2 + $0x930] sm:$0xff]  ;;  %v380_v9 = vld [vmem:[#allocation2 + $0x9b8] sm:$0xff] }
  0x8b   :  { %812 = vmatpush.msrb.mxu0 %v264_v10  ;;  %831 = vmatpush.msrb.mxu1 %v281_v11  ;;  %v330_v10 = vld [vmem:[#allocation2 + $0x828] sm:$0xff]  ;;  %v347_v11 = vld [vmem:[#allocation2 + $0x8b0] sm:$0xff] }
  0x8c   :  { %852 = vmatpush.msrb.mxu2 %v296_v12  ;;  %871 = vmatpush.msrb.mxu3 %v313_v13  ;;  %v362_v12 = vld [vmem:[#allocation2 + $0x928] sm:$0xff]  ;;  %v379_v13 = vld [vmem:[#allocation2 + $0x9b0] sm:$0xff] }
  0x8d   :  { %813 = vmatpush.msrb.mxu0 %v263_v14  ;;  %832 = vmatpush.msrb.mxu1 %v280_v15  ;;  %v329_v14 = vld [vmem:[#allocation2 + $0x820] sm:$0xff]  ;;  %v346_v15 = vld [vmem:[#allocation2 + $0x8a8] sm:$0xff] }
  0x8e   :  { %853 = vmatpush.msrb.mxu2 %v295_v16  ;;  %872 = vmatpush.msrb.mxu3 %v312_v17  ;;  %v361_v16 = vld [vmem:[#allocation2 + $0x920] sm:$0xff]  ;;  %v378_v17 = vld [vmem:[#allocation2 + $0x9a8] sm:$0xff] }
  0x8f   :  { %814 = vmatpush.msrb.mxu0 %v262_v18  ;;  %833 = vmatpush.msrb.mxu1 %v279_v19  ;;  %v328_v18 = vld [vmem:[#allocation2 + $0x818] sm:$0xff]  ;;  %v345_v19 = vld [vmem:[#allocation2 + $0x8a0] sm:$0xff] }
  0x90   :  { %854 = vmatpush.msrb.mxu2 %v294_v20  ;;  %873 = vmatpush.msrb.mxu3 %v311_v23  ;;  %v360_v20 = vld [vmem:[#allocation2 + $0x918] sm:$0xff] }
  0x91   :  { %815 = vmatpush.msrb.mxu0 %v261_v24  ;;  %834 = vmatpush.msrb.mxu1 %v278_v25  ;;  %v344_v23 = vld [vmem:[#allocation2 + $0x898] sm:$0xff]  ;;  %v359_v24 = vld [vmem:[#allocation2 + $0x910] sm:$0xff] }
  0x92   :  { %855 = vmatpush.msrb.mxu2 %v293_v26  ;;  %874 = vmatpush.msrb.mxu3 %v310_v29  ;;  %v376_v25 = vld [vmem:[#allocation2 + $0x998] sm:$0xff]  ;;  %v326_v26 = vld [vmem:[#allocation2 + $0x808] sm:$0xff]  ;;  %v50_v29 = vld [vmem:[%s1255_s0 + $0x28] sm:$0xff] }
  0x93   :  { %816 = vmatmul.f32.vlgmr.msrb.gmra.mxu0 %v516_v30  ;;  %856 = vmatmul.f32.vlgmr.msrb.gmra.mxu2 %v518_v31  ;;  %v56_v30 = vld [vmem:[%s1255_s0 + $0x58] sm:$0xff]  ;;  %524 = vst [vmem:[#allocation1 + $0x20] ss:$4 sm:$0xff] %v50_v29  ;;  %v441_v29 = vld [vmem:[#allocation2 + $0xba0] sm:$0xff] }
  0x94   :  { %880 = vmatpush.msra.mxu0 %v340_v32  ;;  %920 = vmatpush.msra.mxu2 %v372_v33  ;;  %v375_v31 = vld [vmem:[#allocation2 + $0x990] sm:$0xff]  ;;  %v325_v32 = vld [vmem:[#allocation2 + $0x800] sm:$0xff]  ;;  %v342_v33 = vld [vmem:[#allocation2 + $0x888] sm:$0xff]  ;;  %525 = vst [vmem:[#allocation1 + $0x21] ss:$4 sm:$0xff] %v56_v30 }
  0x95   :  { %835 = vmatpush.msrb.mxu1 %v277_v34  ;;  %875 = vmatpush.msrb.mxu3 %v309_v35  ;;  %v357_v34 = vld [vmem:[#allocation2 + $0x900] sm:$0xff]  ;;  %v391_v30 = vld [vmem:[#allocation2 + $0xa10] sm:$0xff] }
  0x96   :  { %836 = vmatmul.f32.vlgmr.msrb.gmra.mxu1 %v517_v36  ;;  %876 = vmatmul.f32.vlgmr.msrb.gmra.mxu3 %v519_v37  ;;  %v62_v35 = vld [vmem:[%s1255_s0 + $0x88] sm:$0xff]  ;;  %v68_v36 = vld [vmem:[%s1255_s0 + $0xb8] sm:$0xff]  ;;  %v374_v37 = vld [vmem:[#allocation2 + $0x988] sm:$0xff] }
  0x97   :  { %881 = vmatpush.msra.mxu0 %v339_v38  ;;  %900 = vmatpush.msra.mxu1 %v356_v39  ;;  %v528_v38 = vld.sshfl [vmem:[#allocation1] sm:$0xff pattern:$0x73625140]  ;;  %526 = vst [vmem:[#allocation1 + $0x22] ss:$4 sm:$0xff] %v62_v35  ;;  %v407_v35 = vld [vmem:[#allocation2 + $0xa90] sm:$0xff] }
  0x98   :  { %921 = vmatpush.msra.mxu2 %v371_v40  ;;  %940 = vmatpush.msra.mxu3 %v388_v41  ;;  %v530_v39 = vld.sshfl [vmem:[#allocation1 + $0x10] sm:$0xff pattern:$0x73625140]  ;;  %527 = vst [vmem:[#allocation1 + $0x23] ss:$4 sm:$0xff] %v68_v36  ;;  %v404_v40 = vld [vmem:[#allocation2 + $0xa78] sm:$0xff] }
  0x99   :  { %882 = vmatpush.msra.mxu0 %v338_v42  ;;  %901 = vmatpush.msra.mxu1 %v355_v43  ;;  %v436_v41 = vld [vmem:[#allocation2 + $0xb78] sm:$0xff]  ;;  %v341_v42 = vld [vmem:[#allocation2 + $0x880] sm:$0xff]  ;;  %v422_v36 = vld [vmem:[#allocation2 + $0xb08] sm:$0xff] }
  0x9a   :  { %922 = vmatpush.msra.mxu2 %v370_v44  ;;  %941 = vmatpush.msra.mxu3 %v387_v45  ;;  %v373_v43 = vld [vmem:[#allocation2 + $0x980] sm:$0xff]  ;;  %v531_v45 = vld.sshfl [vmem:[#allocation1 + $0x18] sm:$0xff pattern:$0x73625140] }
  0x9b   :  { %883 = vmatpush.msra.mxu0 %v337_v46  ;;  %902 = vmatpush.msra.mxu1 %v354_v47  ;;  %v529_v44 = vld.sshfl [vmem:[#allocation1 + $0x8] sm:$0xff pattern:$0x73625140]  ;;  %v403_v46 = vld [vmem:[#allocation2 + $0xa70] sm:$0xff]  ;;  %v420_v47 = vld [vmem:[#allocation2 + $0xaf8] sm:$0xff] }
  0x9c   :  { %923 = vmatpush.msra.mxu2 %v369_v48  ;;  %942 = vmatpush.msra.mxu3 %v386_v49  ;;  %v435_v48 = vld [vmem:[#allocation2 + $0xb70] sm:$0xff]  ;;  %v452_v49 = vld [vmem:[#allocation2 + $0xbf8] sm:$0xff] }
  0x9d   :  { %884 = vmatpush.msra.mxu0 %v336_v50  ;;  %903 = vmatpush.msra.mxu1 %v353_v51  ;;  %v402_v50 = vld [vmem:[#allocation2 + $0xa68] sm:$0xff]  ;;  %v419_v51 = vld [vmem:[#allocation2 + $0xaf0] sm:$0xff] }
  0x9e   :  { %924 = vmatpush.msra.mxu2 %v368_v52  ;;  %943 = vmatpush.msra.mxu3 %v385_v53  ;;  %v434_v52 = vld [vmem:[#allocation2 + $0xb68] sm:$0xff]  ;;  %v451_v53 = vld [vmem:[#allocation2 + $0xbf0] sm:$0xff] }
  0x9f   :  { %885 = vmatpush.msra.mxu0 %v335_v54  ;;  %904 = vmatpush.msra.mxu1 %v352_v55  ;;  %v401_v54 = vld [vmem:[#allocation2 + $0xa60] sm:$0xff]  ;;  %v418_v55 = vld [vmem:[#allocation2 + $0xae8] sm:$0xff] }
  0xa0   :  { %925 = vmatpush.msra.mxu2 %v367_v56  ;;  %944 = vmatpush.msra.mxu3 %v384_v57  ;;  %v433_v56 = vld [vmem:[#allocation2 + $0xb60] sm:$0xff]  ;;  %v450_v57 = vld [vmem:[#allocation2 + $0xbe8] sm:$0xff] }
  0xa1   :  { %886 = vmatpush.msra.mxu0 %v334_v58  ;;  %905 = vmatpush.msra.mxu1 %v351_v59  ;;  %v400_v58 = vld [vmem:[#allocation2 + $0xa58] sm:$0xff]  ;;  %v417_v59 = vld [vmem:[#allocation2 + $0xae0] sm:$0xff] }
  0xa2   :  { %926 = vmatpush.msra.mxu2 %v366_v60  ;;  %945 = vmatpush.msra.mxu3 %v383_v61  ;;  %v432_v60 = vld [vmem:[#allocation2 + $0xb58] sm:$0xff]  ;;  %v449_v61 = vld [vmem:[#allocation2 + $0xbe0] sm:$0xff] }
  0xa3   :  { %887 = vmatpush.msra.mxu0 %v333_v62  ;;  %906 = vmatpush.msra.mxu1 %v350_v63  ;;  %v399_v62 = vld [vmem:[#allocation2 + $0xa50] sm:$0xff]  ;;  %v416_v63 = vld [vmem:[#allocation2 + $0xad8] sm:$0xff] }
  0xa4   :  { %927 = vmatpush.msra.mxu2 %v365_v0  ;;  %946 = vmatpush.msra.mxu3 %v382_v1  ;;  %v431_v0 = vld [vmem:[#allocation2 + $0xb50] sm:$0xff]  ;;  %v448_v1 = vld [vmem:[#allocation2 + $0xbd8] sm:$0xff] }
  0xa5   :  { %888 = vmatpush.msra.mxu0 %v332_v2  ;;  %907 = vmatpush.msra.mxu1 %v349_v3  ;;  %v398_v2 = vld [vmem:[#allocation2 + $0xa48] sm:$0xff]  ;;  %v415_v3 = vld [vmem:[#allocation2 + $0xad0] sm:$0xff] }
  0xa6   :  { %928 = vmatpush.msra.mxu2 %v364_v4  ;;  %947 = vmatpush.msra.mxu3 %v381_v5  ;;  %v430_v4 = vld [vmem:[#allocation2 + $0xb48] sm:$0xff]  ;;  %v447_v5 = vld [vmem:[#allocation2 + $0xbd0] sm:$0xff] }
  0xa7   :  { %889 = vmatpush.msra.mxu0 %v331_v6  ;;  %908 = vmatpush.msra.mxu1 %v348_v7  ;;  %v397_v6 = vld [vmem:[#allocation2 + $0xa40] sm:$0xff]  ;;  %v414_v7 = vld [vmem:[#allocation2 + $0xac8] sm:$0xff] }
  0xa8   :  { %929 = vmatpush.msra.mxu2 %v363_v8  ;;  %948 = vmatpush.msra.mxu3 %v380_v9  ;;  %v429_v8 = vld [vmem:[#allocation2 + $0xb40] sm:$0xff]  ;;  %v446_v9 = vld [vmem:[#allocation2 + $0xbc8] sm:$0xff] }
  0xa9   :  { %890 = vmatpush.msra.mxu0 %v330_v10  ;;  %909 = vmatpush.msra.mxu1 %v347_v11  ;;  %v396_v10 = vld [vmem:[#allocation2 + $0xa38] sm:$0xff]  ;;  %v413_v11 = vld [vmem:[#allocation2 + $0xac0] sm:$0xff] }
  0xaa   :  { %930 = vmatpush.msra.mxu2 %v362_v12  ;;  %949 = vmatpush.msra.mxu3 %v379_v13  ;;  %v428_v12 = vld [vmem:[#allocation2 + $0xb38] sm:$0xff]  ;;  %v445_v13 = vld [vmem:[#allocation2 + $0xbc0] sm:$0xff] }
  0xab   :  { %891 = vmatpush.msra.mxu0 %v329_v14  ;;  %910 = vmatpush.msra.mxu1 %v346_v15  ;;  %v395_v14 = vld [vmem:[#allocation2 + $0xa30] sm:$0xff]  ;;  %v412_v15 = vld [vmem:[#allocation2 + $0xab8] sm:$0xff] }
  0xac   :  { %931 = vmatpush.msra.mxu2 %v361_v16  ;;  %950 = vmatpush.msra.mxu3 %v378_v17  ;;  %v427_v16 = vld [vmem:[#allocation2 + $0xb30] sm:$0xff]  ;;  %v444_v17 = vld [vmem:[#allocation2 + $0xbb8] sm:$0xff] }
  0xad   :  { %892 = vmatpush.msra.mxu0 %v328_v18  ;;  %911 = vmatpush.msra.mxu1 %v345_v19  ;;  %v394_v18 = vld [vmem:[#allocation2 + $0xa28] sm:$0xff]  ;;  %v411_v19 = vld [vmem:[#allocation2 + $0xab0] sm:$0xff] }
  0xae   :  { %932 = vmatpush.msra.mxu2 %v360_v20  ;;  %951 = vmatpush.msra.mxu3 %v377_v21  ;;  %v426_v20 = vld [vmem:[#allocation2 + $0xb28] sm:$0xff]  ;;  %v443_v21 = vld [vmem:[#allocation2 + $0xbb0] sm:$0xff] }
  0xaf   :  { %893 = vmatpush.msra.mxu0 %v327_v22  ;;  %912 = vmatpush.msra.mxu1 %v344_v23  ;;  %v393_v22 = vld [vmem:[#allocation2 + $0xa20] sm:$0xff]  ;;  %v410_v23 = vld [vmem:[#allocation2 + $0xaa8] sm:$0xff] }
  0xb0   :  { %933 = vmatpush.msra.mxu2 %v359_v24  ;;  %952 = vmatpush.msra.mxu3 %v376_v25  ;;  %v425_v24 = vld [vmem:[#allocation2 + $0xb20] sm:$0xff]  ;;  %v442_v25 = vld [vmem:[#allocation2 + $0xba8] sm:$0xff] }
  0xb1   :  { %894 = vmatpush.msra.mxu0 %v326_v26  ;;  %913 = vmatpush.msra.mxu1 %v343_v27  ;;  %v392_v26 = vld [vmem:[#allocation2 + $0xa18] sm:$0xff]  ;;  %v409_v27 = vld [vmem:[#allocation2 + $0xaa0] sm:$0xff] }
  0xb2   :  { %934 = vmatpush.msra.mxu2 %v358_v28  ;;  %953 = vmatpush.msra.mxu3 %v375_v31  ;;  %v424_v28 = vld [vmem:[#allocation2 + $0xb18] sm:$0xff] }
  0xb3   :  { %895 = vmatpush.msra.mxu0 %v325_v32  ;;  %914 = vmatpush.msra.mxu1 %v342_v33  ;;  %v408_v31 = vld [vmem:[#allocation2 + $0xa98] sm:$0xff]  ;;  %v423_v32 = vld [vmem:[#allocation2 + $0xb10] sm:$0xff] }
  0xb4   :  { %935 = vmatpush.msra.mxu2 %v357_v34  ;;  %954 = vmatpush.msra.mxu3 %v374_v37  ;;  %v440_v33 = vld [vmem:[#allocation2 + $0xb98] sm:$0xff]  ;;  %v390_v34 = vld [vmem:[#allocation2 + $0xa08] sm:$0xff]  ;;  %v439_v37 = vld [vmem:[#allocation2 + $0xb90] sm:$0xff] }
  0xb5   :  { %896 = vmatmul.f32.vlgmr.msra.gmra.mxu0 %v528_v38  ;;  %936 = vmatmul.f32.vlgmr.msra.gmra.mxu2 %v530_v39  ;;  %v389_v38 = vld [vmem:[#allocation2 + $0xa00] sm:$0xff]  ;;  %v406_v39 = vld [vmem:[#allocation2 + $0xa88] sm:$0xff] }
  0xb6   :  { %960 = vmatpush.msrb.mxu0 %v404_v40  ;;  %1000 = vmatpush.msrb.mxu2 %v436_v41  ;;  %v421_v40 = vld [vmem:[#allocation2 + $0xb00] sm:$0xff]  ;;  %v438_v41 = vld [vmem:[#allocation2 + $0xb88] sm:$0xff] }
  0xb7   :  { %915 = vmatpush.msra.mxu1 %v341_v42  ;;  %955 = vmatpush.msra.mxu3 %v373_v43  ;;  %v532_v42 = vld.sshfl [vmem:[#allocation1 + $0x20] sm:$0xff pattern:$0x73625140]  ;;  %v534_v43 = vld.sshfl [vmem:[#allocation1 + $0x30] sm:$0xff pattern:$0x73625140] }
  0xb8   :  { %916 = vmatmul.f32.vlgmr.msra.gmra.mxu1 %v529_v44  ;;  %956 = vmatmul.f32.vlgmr.msra.gmra.mxu3 %v531_v45  ;;  %v405_v44 = vld [vmem:[#allocation2 + $0xa80] sm:$0xff] }
  0xb9   :  { %961 = vmatpush.msrb.mxu0 %v403_v46  ;;  %980 = vmatpush.msrb.mxu1 %v420_v47  ;;  %v437_v45 = vld [vmem:[#allocation2 + $0xb80] sm:$0xff]  ;;  %v535_v47 = vld.sshfl [vmem:[#allocation1 + $0x38] sm:$0xff pattern:$0x73625140] }
  0xba   :  { %1001 = vmatpush.msrb.mxu2 %v435_v48  ;;  %1020 = vmatpush.msrb.mxu3 %v452_v49  ;;  %v533_v46 = vld.sshfl [vmem:[#allocation1 + $0x28] sm:$0xff pattern:$0x73625140] }
  0xbb   :  { %962 = vmatpush.msrb.mxu0 %v402_v50  ;;  %981 = vmatpush.msrb.mxu1 %v419_v51  ;;  %v1068_v48 = vld [vmem:[#allocation5] ss:$0 sm:$0xff] }
  0xbc   :  { %1002 = vmatpush.msrb.mxu2 %v434_v52  ;;  %1021 = vmatpush.msrb.mxu3 %v451_v53 }
  0xbd   :  { %963 = vmatpush.msrb.mxu0 %v401_v54  ;;  %982 = vmatpush.msrb.mxu1 %v418_v55 }
  0xbe   :  { %1003 = vmatpush.msrb.mxu2 %v433_v56  ;;  %1022 = vmatpush.msrb.mxu3 %v450_v57 }
  0xbf   :  { %964 = vmatpush.msrb.mxu0 %v400_v58  ;;  %983 = vmatpush.msrb.mxu1 %v417_v59 }
  0xc0   :  { %1004 = vmatpush.msrb.mxu2 %v432_v60  ;;  %1023 = vmatpush.msrb.mxu3 %v449_v61 }
  0xc1   :  { %965 = vmatpush.msrb.mxu0 %v399_v62  ;;  %984 = vmatpush.msrb.mxu1 %v416_v63 }
  0xc2   :  { %1005 = vmatpush.msrb.mxu2 %v431_v0  ;;  %1024 = vmatpush.msrb.mxu3 %v448_v1 }
  0xc3   :  { %966 = vmatpush.msrb.mxu0 %v398_v2  ;;  %985 = vmatpush.msrb.mxu1 %v415_v3 }
  0xc4   :  { %1006 = vmatpush.msrb.mxu2 %v430_v4  ;;  %1025 = vmatpush.msrb.mxu3 %v447_v5 }
  0xc5   :  { %967 = vmatpush.msrb.mxu0 %v397_v6  ;;  %986 = vmatpush.msrb.mxu1 %v414_v7 }
  0xc6   :  { %1007 = vmatpush.msrb.mxu2 %v429_v8  ;;  %1026 = vmatpush.msrb.mxu3 %v446_v9 }
  0xc7   :  { %968 = vmatpush.msrb.mxu0 %v396_v10  ;;  %987 = vmatpush.msrb.mxu1 %v413_v11 }
  0xc8   :  { %1008 = vmatpush.msrb.mxu2 %v428_v12  ;;  %1027 = vmatpush.msrb.mxu3 %v445_v13 }
  0xc9   :  { %969 = vmatpush.msrb.mxu0 %v395_v14  ;;  %988 = vmatpush.msrb.mxu1 %v412_v15 }
  0xca   :  { %1009 = vmatpush.msrb.mxu2 %v427_v16  ;;  %1028 = vmatpush.msrb.mxu3 %v444_v17  ;;  %v577_v49 = vpop.f32.mrf.mxu0 }
  0xcb   :  { %970 = vmatpush.msrb.mxu0 %v394_v18  ;;  %989 = vmatpush.msrb.mxu1 %v411_v19  ;;  %v578_v50 = vadd.f32 %v1068_v48, %v577_v49 }
  0xcc   :  { %1010 = vmatpush.msrb.mxu2 %v426_v20  ;;  %1029 = vmatpush.msrb.mxu3 %v443_v21 }
  0xcd   :  { %971 = vmatpush.msrb.mxu0 %v393_v22  ;;  %990 = vmatpush.msrb.mxu1 %v410_v23  ;;  %v597_v51 = vpop.f32.mrf.mxu1 }
  0xce   :  { %1011 = vmatpush.msrb.mxu2 %v425_v24  ;;  %1030 = vmatpush.msrb.mxu3 %v442_v25  ;;  %v598_v52 = vadd.f32 %v597_v51, %v578_v50 }
  0xcf   :  { %972 = vmatpush.msrb.mxu0 %v392_v26  ;;  %991 = vmatpush.msrb.mxu1 %v409_v27 }
  0xd0   :  { %1012 = vmatpush.msrb.mxu2 %v424_v28  ;;  %1031 = vmatpush.msrb.mxu3 %v441_v29  ;;  %v617_v53 = vpop.f32.mrf.mxu2 }
  0xd1   :  { %973 = vmatpush.msrb.mxu0 %v391_v30  ;;  %992 = vmatpush.msrb.mxu1 %v408_v31  ;;  %v618_v54 = vadd.f32 %v617_v53, %v598_v52 }
  0xd2   :  { %1013 = vmatpush.msrb.mxu2 %v423_v32  ;;  %1032 = vmatpush.msrb.mxu3 %v440_v33 }
  0xd3   :  { %974 = vmatpush.msrb.mxu0 %v390_v34  ;;  %993 = vmatpush.msrb.mxu1 %v407_v35  ;;  %v637_v55 = vpop.f32.mrf.mxu3 }
  0xd4   :  { %1014 = vmatpush.msrb.mxu2 %v422_v36  ;;  %1033 = vmatpush.msrb.mxu3 %v439_v37  ;;  %v638_v56 = vadd.f32 %v637_v55, %v618_v54 }
  0xd5   :  { %975 = vmatpush.msrb.mxu0 %v389_v38  ;;  %994 = vmatpush.msrb.mxu1 %v406_v39 }
  0xd6   :  { %1015 = vmatpush.msrb.mxu2 %v421_v40  ;;  %1034 = vmatpush.msrb.mxu3 %v438_v41  ;;  %v657_v57 = vpop.f32.mrf.mxu0 }
  0xd7   :  { %976 = vmatmul.f32.vlgmr.msrb.gmra.mxu0 %v532_v42  ;;  %1016 = vmatmul.f32.vlgmr.msrb.gmra.mxu2 %v534_v43  ;;  %v658_v58 = vadd.f32 %v657_v57, %v638_v56 }
  0xd8   :  { %995 = vmatpush.msrb.mxu1 %v405_v44  ;;  %1035 = vmatpush.msrb.mxu3 %v437_v45 }
  0xd9   :  { %996 = vmatmul.f32.vlgmr.msrb.gmra.mxu1 %v533_v46  ;;  %1036 = vmatmul.f32.vlgmr.msrb.gmra.mxu3 %v535_v47  ;;  %v677_v59 = vpop.f32.mrf.mxu1 }
  0xda   :  { %v678_v60 = vadd.f32 %v677_v59, %v658_v58  ;;  %v697_v61 = vpop.f32.mrf.mxu2 }
  0xdc   :  { %v698_v62 = vadd.f32 %v697_v61, %v678_v60 }
  0xdd   :  { %v717_v63 = vpop.f32.mrf.mxu3 }
  0xde   :  { %v718_v1 = vadd.f32 %v717_v63, %v698_v62 }
  0xee   :  { %v737_v0 = vpop.f32.mrf.mxu0 }
  0xef   :  { %v738_v2 = vadd.f32 %v737_v0, %v718_v1 }
  0xf1   :  { %v757_v3 = vpop.f32.mrf.mxu1 }
  0xf2   :  { %v758_v5 = vadd.f32 %v757_v3, %v738_v2 }
  0xf4   :  { %v777_v4 = vpop.f32.mrf.mxu2 }
  0xf5   :  { %v778_v6 = vadd.f32 %v777_v4, %v758_v5 }
  0xf7   :  { %v797_v7 = vpop.f32.mrf.mxu3 }
  0xf8   :  { %v798_v9 = vadd.f32 %v797_v7, %v778_v6 }
 0x110   :  { %v817_v8 = vpop.f32.mrf.mxu0 }
 0x111   :  { %v818_v10 = vadd.f32 %v817_v8, %v798_v9 }
 0x113   :  { %v837_v11 = vpop.f32.mrf.mxu1 }
 0x114   :  { %v838_v13 = vadd.f32 %v837_v11, %v818_v10 }
 0x116   :  { %v857_v12 = vpop.f32.mrf.mxu2 }
 0x117   :  { %v858_v14 = vadd.f32 %v857_v12, %v838_v13 }
 0x119   :  { %v877_v15 = vpop.f32.mrf.mxu3 }
 0x11a   :  { %v878_v17 = vadd.f32 %v877_v15, %v858_v14 }
 0x132   :  { %v897_v16 = vpop.f32.mrf.mxu0 }
 0x133   :  { %v898_v18 = vadd.f32 %v897_v16, %v878_v17 }
 0x135   :  { %v917_v19 = vpop.f32.mrf.mxu1 }
 0x136   :  { %v918_v21 = vadd.f32 %v917_v19, %v898_v18 }
 0x138   :  { %v937_v20 = vpop.f32.mrf.mxu2 }
 0x139   :  { %v938_v22 = vadd.f32 %v937_v20, %v918_v21 }
 0x13b   :  { %v957_v23 = vpop.f32.mrf.mxu3 }
 0x13c   :  { %v958_v24 = vadd.f32 %v957_v23, %v938_v22 }
 0x154   :  { %v977_v25 = vpop.f32.mrf.mxu0 }
 0x155   :  { %v978_v26 = vadd.f32 %v977_v25, %v958_v24 }
 0x156   :  { %v997_v27 = vpop.f32.mrf.mxu1 }
 0x157   :  { %v998_v28 = vadd.f32 %v997_v27, %v978_v26 }
 0x15a   :  { %v1017_v29 = vpop.f32.mrf.mxu2 }
 0x15b   :  { %v1018_v30 = vadd.f32 %v1017_v29, %v998_v28 }
 0x15c   :  { %v1037_v31 = vpop.f32.mrf.mxu3 }
 0x15d   :  { %v1038_v32 = vadd.f32 %v1037_v31, %v1018_v30 }
 0x15f   :  { %1040 = vst [vmem:[#allocation7] sm:$0xff] %v1038_v32 }
 0x160   :  { %1044 = vsyncadd [#allocation4], 96  ;;  %s1047_s15 = sshll.u32 %s1258_s3, 4  ;;  %s1151_s16 = smov [#allocation7]   ;;  %s1048_s15 = int_to_ptr.hbm [resolvable:$true] %s1047_s15 }
 0x161   :  { %s1045_s17 = sshll.u32 %s1151_s16, 4  ;;  %s1152_s18 = smov 32   ;;  %s1046_s17 = int_to_ptr.vmem [resolvable:$true] %s1045_s17 }
 0x162   :  { %s1153_s19 = smov 2  }
 0x163   :  { %1053 = dma.vmem_to_hbm [thread:$0]  %s1046_s17, 32, %s1048_s15, [#allocation4], %s1152_s18, %s1152_s18, %s1153_s19  }
 0x164   :  { %1145 = dma.done.wait [#allocation4], 128  }
 0x165   :  { %1146 = vsyncadd [#allocation4], 4294967168 }
 0x166   :  { %1058 = vsyncpa [#allocation3], 1 }
 0x167   :  { %1059 = vsyncpa [#allocation6], 1 }
 0x168   :  { %1060 = vsyncpa [#allocation4], 1 }

</bundles_post_ra>
